<compile_context>
chip_gen: v6e
topology: v6e:2x2x1
jax: 0.10.0
libtpu: 0.0.40
codegen_flags: <defaults>
</compile_context>

<pallas_src>
import jax
import jax.numpy as jnp
from jax import lax
from jax.experimental import pallas as pl
from jax.experimental.pallas import tpu as pltpu

LANES = 128
SUB = 8
TARGET_TILE_BYTES = 4 * 1024 * 1024   # per input per grid step
CHUNK_ROWS_MAX = 1024                 # rows per in-kernel compute chunk


def _num_parallel_shards():
    """2 for devices exposing two TensorCores (v4/v5p megacore, v7x), else 1."""
    try:
        kind = jax.devices()[0].device_kind.lower()
    except Exception:
        return 1
    single_tc = ("v2", "v3", "v5 lite", "v5lite", "v5e", "v6 lite", "v6lite", "v6e")
    if any(tag in kind for tag in single_tc):
        return 1
    return 2


def _make_kernel(rows, tile_rows, chunk_rows, num_blocks, blocks_per_core,
                 ncores, ragged_last):
    """All arguments are static Python ints/bools."""
    last_block = num_blocks - 1
    num_full_chunks = tile_rows // chunk_rows
    rem_rows = tile_rows - num_full_chunks * chunk_rows     # multiple of SUB
    valid_last = rows - last_block * tile_rows              # valid rows in last block
    has_overflow = ncores * blocks_per_core > num_blocks

    def _chunk_sums(p_ref, t_ref, start, size, limit):
        # Sum of squares over rows [start, start+size) of this tile, folded to
        # a lane/sublane-resident (SUB, LANES) partial (pure VPU work).
        p = p_ref[pl.ds(start, size), :].astype(jnp.float32)
        t = t_ref[pl.ds(start, size), :].astype(jnp.float32)
        d = p - t
        dd = d * d
        tt = t * t
        if limit is not None:
            row_ids = start + lax.broadcasted_iota(jnp.int32, (size, 1), 0)
            valid = row_ids < limit
            dd = jnp.where(valid, dd, 0.0)
            tt = jnp.where(valid, tt, 0.0)
        folds = size // SUB
        return (dd.reshape(folds, SUB, LANES).sum(axis=0),
                tt.reshape(folds, SUB, LANES).sum(axis=0))

    def _accumulate(p_ref, t_ref, dd_ref, tt_ref, limit):
        acc_dd = jnp.zeros((SUB, LANES), jnp.float32)
        acc_tt = jnp.zeros((SUB, LANES), jnp.float32)
        if num_full_chunks > 0:
            def body(ci, carry):
                a_dd, a_tt = carry
                start = pl.multiple_of(ci * chunk_rows, SUB)
                c_dd, c_tt = _chunk_sums(p_ref, t_ref, start, chunk_rows, limit)
                return a_dd + c_dd, a_tt + c_tt
            acc_dd, acc_tt = lax.fori_loop(0, num_full_chunks, body,
                                           (acc_dd, acc_tt))
        if rem_rows > 0:
            c_dd, c_tt = _chunk_sums(p_ref, t_ref, num_full_chunks * chunk_rows,
                                     rem_rows, limit)
            acc_dd = acc_dd + c_dd
            acc_tt = acc_tt + c_tt
        dd_ref[...] += acc_dd
        tt_ref[...] += acc_tt

    def kernel(p_ref, t_ref, dd_ref, tt_ref):
        j = pl.program_id(1)   # row-block index within this shard

        @pl.when(j == 0)
        def _():
            dd_ref[...] = jnp.zeros_like(dd_ref)
            tt_ref[...] = jnp.zeros_like(tt_ref)

        if ncores > 1:
            blk = pl.program_id(0) * blocks_per_core + j
        else:
            blk = j

        if ragged_last or has_overflow:
            # Interior blocks: clean (mask-free) path.
            @pl.when(blk < last_block)
            def _():
                _accumulate(p_ref, t_ref, dd_ref, tt_ref, limit=None)

            # Last logical block: mask rows past the end of the array.
            @pl.when(blk == last_block)
            def _():
                _accumulate(p_ref, t_ref, dd_ref, tt_ref,
                            limit=valid_last if ragged_last else None)
            # blk > last_block (overflow steps of an uneven shard split): skip.
        else:
            _accumulate(p_ref, t_ref, dd_ref, tt_ref, limit=None)

    return kernel


def relative_error(pred, target, eps=1e-7):
    assert pred.shape == target.shape, "Prediction and target must have the same shape"

    n = pred.size
    pred_flat = jnp.ravel(pred)
    targ_flat = jnp.ravel(target)

    rows = n // LANES
    n_main = rows * LANES

    if rows < SUB:
        # Too small for even one (8, 128) tile: pure-JAX fallback.
        p32 = pred_flat.astype(jnp.float32)
        t32 = targ_flat.astype(jnp.float32)
        d = p32 - t32
        return jnp.sqrt(jnp.sum(d * d)) / (jnp.sqrt(jnp.sum(t32 * t32)) + eps)

    if n_main < n:
        # < 128-element tail: plain JAX. The prefix slice below is the only
        # case that costs an HBM copy (n % 128 != 0).
        p_tail = pred_flat[n_main:].astype(jnp.float32)
        t_tail = targ_flat[n_main:].astype(jnp.float32)
        d_tail = p_tail - t_tail
        tail_dd = jnp.sum(d_tail * d_tail)
        tail_tt = jnp.sum(t_tail * t_tail)
        p_main = pred_flat[:n_main].reshape(rows, LANES)
        t_main = targ_flat[:n_main].reshape(rows, LANES)
    else:
        tail_dd = jnp.float32(0.0)
        tail_tt = jnp.float32(0.0)
        # Free bitcast reshape: no prefix-slice copy in the common case.
        p_main = pred_flat.reshape(rows, LANES)
        t_main = targ_flat.reshape(rows, LANES)

    # ---- Tiling (static Python ints). ----
    itemsize = max(jnp.dtype(pred.dtype).itemsize, jnp.dtype(target.dtype).itemsize)
    tile_rows_max = max(SUB, (TARGET_TILE_BYTES // (LANES * itemsize)) // SUB * SUB)
    if rows >= tile_rows_max:
        tile_rows = tile_rows_max
    else:
        tile_rows = (rows // SUB) * SUB
    chunk_rows = min(tile_rows, CHUNK_ROWS_MAX)

    num_blocks = pl.cdiv(rows, tile_rows)
    ragged_last = (rows % tile_rows) != 0

    ncores = max(1, min(_num_parallel_shards(), num_blocks))
    blocks_per_core = pl.cdiv(num_blocks, ncores)
    has_overflow = ncores * blocks_per_core > num_blocks
    last_block = num_blocks - 1

    if has_overflow:
        def in_index_map(c, j):
            # Keep overflow steps' DMAs in-bounds; they are skipped in-kernel.
            return (jnp.minimum(c * blocks_per_core + j, last_block), 0)
    elif ncores > 1:
        def in_index_map(c, j):
            return (c * blocks_per_core + j, 0)
    else:
        def in_index_map(c, j):
            return (j, 0)

    in_spec = pl.BlockSpec((tile_rows, LANES), in_index_map)
    out_spec = pl.BlockSpec((None, SUB, LANES), lambda c, j: (c, 0, 0))

    kernel = _make_kernel(rows, tile_rows, chunk_rows, num_blocks,
                          blocks_per_core, ncores, ragged_last)

    dd_parts, tt_parts = pl.pallas_call(
        kernel,
        out_shape=(
            jax.ShapeDtypeStruct((ncores, SUB, LANES), jnp.float32),
            jax.ShapeDtypeStruct((ncores, SUB, LANES), jnp.float32),
        ),
        grid_spec=pltpu.PrefetchScalarGridSpec(
            num_scalar_prefetch=0,
            grid=(ncores, blocks_per_core),
            in_specs=[in_spec, in_spec],
            out_specs=[out_spec, out_spec],
        ),
        compiler_params=pltpu.CompilerParams(
            # TODO(synk): on v7x, verify "parallel" actually shards axis 0 across
            # both TensorCores; if not, switch axis 0 to pltpu.CORE_PARALLEL.
            dimension_semantics=("parallel", "arbitrary"),
            vmem_limit_bytes=32 * 1024 * 1024,
        ),
    )(p_main, t_main)

    sum_dd = jnp.sum(dd_parts) + tail_dd
    sum_tt = jnp.sum(tt_parts) + tail_tt

    return jnp.sqrt(sum_dd) / (jnp.sqrt(sum_tt) + eps)


if __name__ == "__main__":
    key = jax.random.PRNGKey(0)
    k1, k2, k3, k4 = jax.random.split(key, 4)

    # Primary example (small, 128-divisible size -> free bitcast reshape path).
    pred = jax.random.normal(k1, (2, 4, 16, 16), dtype=jnp.float32)
    target = jax.random.normal(k2, (2, 4, 16, 16), dtype=jnp.float32)

    rel_err = jax.jit(relative_error)
    out = rel_err(pred, target)
    jax.block_until_ready(out)

    ref = jnp.linalg.norm((pred - target).ravel()) / (
        jnp.linalg.norm(target.ravel()) + 1e-7)
    assert jnp.allclose(out, ref, rtol=1e-5, atol=1e-6), (out, ref)

    # Ragged size: exercises the gated masked last block and the <128-elem tail.
    pred2 = jax.random.normal(k3, (17, 131), dtype=jnp.float32)
    target2 = jax.random.normal(k4, (17, 131), dtype=jnp.float32)
    out2 = jax.jit(relative_error)(pred2, target2)
    jax.block_until_ready(out2)
    ref2 = jnp.linalg.norm((pred2 - target2).ravel()) / (
        jnp.linalg.norm(target2.ravel()) + 1e-7)
    assert jnp.allclose(out2, ref2, rtol=1e-5, atol=1e-6), (out2, ref2)

    print("KERNEL_OK")
</pallas_src>

<mosaic_0001>
module attributes {stable_mosaic.version = 11 : i64} {
  func.func @kernel(%arg0: i32, %arg1: i32, %arg2: memref<16x128xf32, #tpu.memory_space<vmem>>, %arg3: memref<16x128xf32, #tpu.memory_space<vmem>>, %arg4: memref<1x8x128xf32, #tpu.memory_space<vmem>>, %arg5: memref<1x8x128xf32, #tpu.memory_space<vmem>>) attributes {dimension_semantics = [#tpu.dimension_semantics<parallel>, #tpu.dimension_semantics<arbitrary>], iteration_bounds = array<i64: 1, 1>, scalar_prefetch = 0 : i64, scratch_operands = 0 : i64, tpu.core_type = #tpu.core_type<tc>, window_params = [{transform_indices = @transform_0, window_bounds = array<i64: 16, 128>}, {transform_indices = @transform_1, window_bounds = array<i64: 16, 128>}, {transform_indices = @transform_2, window_bounds = array<i64: 1, 8, 128>}, {transform_indices = @transform_3, window_bounds = array<i64: 1, 8, 128>}]} {
    %c0_i32 = arith.constant 0 : i32
    %0 = arith.cmpi eq, %arg1, %c0_i32 : i32
    %1 = arith.extui %0 : i1 to i32
    %c0_i32_0 = arith.constant 0 : i32
    %2 = arith.cmpi ne, %1, %c0_i32_0 : i32
    scf.if %2 {
      %cst_18 = arith.constant 0.000000e+00 : f32
      %32 = vector.broadcast %cst_18 : f32 to vector<8x128xf32>
      %c0_19 = arith.constant 0 : index
      %c0_20 = arith.constant 0 : index
      %c0_21 = arith.constant 0 : index
      %33 = vector.load %arg4[%c0_19, %c0_20, %c0_21] : memref<1x8x128xf32, #tpu.memory_space<vmem>>, vector<1x8x128xf32>
      %34 = vector.shape_cast %33 : vector<1x8x128xf32> to vector<8x128xf32>
      %35 = vector.shape_cast %32 : vector<8x128xf32> to vector<1x8x128xf32>
      tpu.vector_store %arg4[%c0_19, %c0_20, %c0_21], %35 {strides = array<i32>} : memref<1x8x128xf32, #tpu.memory_space<vmem>>, vector<1x8x128xf32>,
      %cst_22 = arith.constant 0.000000e+00 : f32
      %36 = vector.broadcast %cst_22 : f32 to vector<8x128xf32>
      %c0_23 = arith.constant 0 : index
      %c0_24 = arith.constant 0 : index
      %c0_25 = arith.constant 0 : index
      %37 = vector.load %arg5[%c0_23, %c0_24, %c0_25] : memref<1x8x128xf32, #tpu.memory_space<vmem>>, vector<1x8x128xf32>
      %38 = vector.shape_cast %37 : vector<1x8x128xf32> to vector<8x128xf32>
      %39 = vector.shape_cast %36 : vector<8x128xf32> to vector<1x8x128xf32>
      tpu.vector_store %arg5[%c0_23, %c0_24, %c0_25], %39 {strides = array<i32>} : memref<1x8x128xf32, #tpu.memory_space<vmem>>, vector<1x8x128xf32>,
    } else {
    }
    %cst = arith.constant 0.000000e+00 : f32
    %3 = vector.broadcast %cst : f32 to vector<8x128xf32>
    %cst_1 = arith.constant 0.000000e+00 : f32
    %4 = vector.broadcast %cst_1 : f32 to vector<8x128xf32>
    %c0_i32_2 = arith.constant 0 : i32
    %c16_i32 = arith.constant 16 : i32
    %5 = arith.muli %c0_i32_2, %c16_i32 : i32
    %6 = tpu.assume_multiple %5, 8 : i32
    %7 = arith.index_cast %6 : i32 to index
    %c0 = arith.constant 0 : index
    %8 = vector.load %arg2[%7, %c0] : memref<16x128xf32, #tpu.memory_space<vmem>>, vector<16x128xf32>
    %9 = arith.index_cast %6 : i32 to index
    %c0_3 = arith.constant 0 : index
    %10 = vector.load %arg3[%9, %c0_3] : memref<16x128xf32, #tpu.memory_space<vmem>>, vector<16x128xf32>
    %11 = arith.subf %8, %10 : vector<16x128xf32>
    %12 = arith.mulf %11, %11 : vector<16x128xf32>
    %13 = arith.mulf %10, %10 : vector<16x128xf32>
    %14 = vector.shape_cast %12 : vector<16x128xf32> to vector<2x8x128xf32>
    %cst_4 = arith.constant dense<0.000000e+00> : vector<8x128xf32>
    %15 = vector.multi_reduction <add>, %14, %cst_4 [0] : vector<2x8x128xf32> to vector<8x128xf32>
    %16 = vector.shape_cast %13 : vector<16x128xf32> to vector<2x8x128xf32>
    %cst_5 = arith.constant dense<0.000000e+00> : vector<8x128xf32>
    %17 = vector.multi_reduction <add>, %16, %cst_5 [0] : vector<2x8x128xf32> to vector<8x128xf32>
    %18 = arith.addf %3, %15 : vector<8x128xf32>
    %19 = arith.addf %4, %17 : vector<8x128xf32>
    %c1_i32 = arith.constant 1 : i32
    %c0_6 = arith.constant 0 : index
    %c0_7 = arith.constant 0 : index
    %c0_8 = arith.constant 0 : index
    %20 = vector.load %arg4[%c0_6, %c0_7, %c0_8] : memref<1x8x128xf32, #tpu.memory_space<vmem>>, vector<1x8x128xf32>
    %21 = vector.shape_cast %20 : vector<1x8x128xf32> to vector<8x128xf32>
    %22 = arith.addf %21, %18 : vector<8x128xf32>
    %c0_9 = arith.constant 0 : index
    %c0_10 = arith.constant 0 : index
    %c0_11 = arith.constant 0 : index
    %23 = vector.load %arg4[%c0_9, %c0_10, %c0_11] : memref<1x8x128xf32, #tpu.memory_space<vmem>>, vector<1x8x128xf32>
    %24 = vector.shape_cast %23 : vector<1x8x128xf32> to vector<8x128xf32>
    %25 = vector.shape_cast %22 : vector<8x128xf32> to vector<1x8x128xf32>
    tpu.vector_store %arg4[%c0_9, %c0_10, %c0_11], %25 {strides = array<i32>} : memref<1x8x128xf32, #tpu.memory_space<vmem>>, vector<1x8x128xf32>,
    %c0_12 = arith.constant 0 : index
    %c0_13 = arith.constant 0 : index
    %c0_14 = arith.constant 0 : index
    %26 = vector.load %arg5[%c0_12, %c0_13, %c0_14] : memref<1x8x128xf32, #tpu.memory_space<vmem>>, vector<1x8x128xf32>
    %27 = vector.shape_cast %26 : vector<1x8x128xf32> to vector<8x128xf32>
    %28 = arith.addf %27, %19 : vector<8x128xf32>
    %c0_15 = arith.constant 0 : index
    %c0_16 = arith.constant 0 : index
    %c0_17 = arith.constant 0 : index
    %29 = vector.load %arg5[%c0_15, %c0_16, %c0_17] : memref<1x8x128xf32, #tpu.memory_space<vmem>>, vector<1x8x128xf32>
    %30 = vector.shape_cast %29 : vector<1x8x128xf32> to vector<8x128xf32>
    %31 = vector.shape_cast %28 : vector<8x128xf32> to vector<1x8x128xf32>
    tpu.vector_store %arg5[%c0_15, %c0_16, %c0_17], %31 {strides = array<i32>} : memref<1x8x128xf32, #tpu.memory_space<vmem>>, vector<1x8x128xf32>,
    return
  }
  func.func @transform_0(%arg0: i32, %arg1: i32) -> (i32, i32) {
    %c0_i32 = arith.constant 0 : i32
    %c0_i32_0 = arith.constant 0 : i32
    return %arg1, %c0_i32 : i32, i32
  }
  func.func @transform_1(%arg0: i32, %arg1: i32) -> (i32, i32) {
    %c0_i32 = arith.constant 0 : i32
    %c0_i32_0 = arith.constant 0 : i32
    return %arg1, %c0_i32 : i32, i32
  }
  func.func @transform_2(%arg0: i32, %arg1: i32) -> (i32, i32, i32) {
    %c0_i32 = arith.constant 0 : i32
    %c0_i32_0 = arith.constant 0 : i32
    %c0_i32_1 = arith.constant 0 : i32
    return %arg0, %c0_i32, %c0_i32_0 : i32, i32, i32
  }
  func.func @transform_3(%arg0: i32, %arg1: i32) -> (i32, i32, i32) {
    %c0_i32 = arith.constant 0 : i32
    %c0_i32_0 = arith.constant 0 : i32
    %c0_i32_1 = arith.constant 0 : i32
    return %arg0, %c0_i32, %c0_i32_0 : i32, i32, i32
  }
}

</mosaic_0001>

<bundles_post_ra>
// kernel: relative_error.1
= control target key start
LH: loop header
LB: loop body
LE: loop exit
PB: predicated region body
PF: predicated region fallthrough
CT: control target
= control target key end

     0   :  { %s86_s0 = inlined_call_operand.vmem [shape: f32[16,128], index: 0, kind: input, shape index: {}]   ;;  %s87_s1 = inlined_call_operand.vmem [shape: f32[16,128], index: 1, kind: input, shape index: {}]   ;;  %s88_s3 = inlined_call_operand.vmem [shape: f32[1,8,128], index: 3, kind: output, shape index: {1}]   ;;  %s89_s2 = inlined_call_operand.vmem [shape: f32[1,8,128], index: 2, kind: output, shape index: {0}]  }
   0x1   :  { %v19_v0 = vld [vmem:[%s86_s0] sm:$0xff]  ;;  %v20_v1 = vld [vmem:[%s86_s0 + $0x8] sm:$0xff] }
   0x2   :  { %v21_v2 = vld [vmem:[%s87_s1] sm:$0xff]  ;;  %v22_v3 = vld [vmem:[%s87_s1 + $0x8] sm:$0xff] }
   0x3   :  { %v23_v4 = vsub.f32 %v19_v0, %v21_v2  ;;  %v27_v5 = vmul.f32 %v21_v2, %v21_v2  ;;  %v24_v6 = vsub.f32 %v20_v1, %v22_v3  ;;  %v28_v7 = vmul.f32 %v22_v3, %v22_v3 }
   0x5   :  { %v25_v8 = vmul.f32 %v23_v4, %v23_v4  ;;  %v26_v9 = vmul.f32 %v24_v6, %v24_v6  ;;  %v30_v10 = vadd.f32 %v28_v7, %v27_v5 }
   0x7   :  { %v29_v11 = vadd.f32 %v26_v9, %v25_v8  ;;  %38 = vst [vmem:[%s88_s3] sm:$0xff] %v30_v10 }
   0x9   :  { %35 = vst [vmem:[%s89_s2] sm:$0xff] %v29_v11 }

</bundles_post_ra>
